<compile_context>
chip_gen: v6e
topology: v6e:2x2x1
jax: 0.10.0
libtpu: 0.0.40
codegen_flags: <defaults>
</compile_context>

<pallas_src>
import jax
import jax.numpy as jnp
from jax.experimental import pallas as pl
from jax.experimental.pallas import tpu as pltpu


def _mlp_kernel(x_ref, w1_ref, b1_ref, w2_ref, b2_ref, o_ref):
    # x:  (Bt, F)      f32
    # w1: (F, H)       f32   (pre-transposed -> no in-kernel transpose)
    # b1: (1, H)       f32
    # w2: (H, E_pad)   f32   (pre-transposed, zero-padded to 128 lanes)
    # b2: (1, E_pad)   f32
    x = x_ref[...]

    # fc1 + ReLU (MXU matmul, f32 accumulation; ReLU/bias on the VPU in f32)
    h = jnp.dot(x, w1_ref[...], preferred_element_type=jnp.float32) + b1_ref[...]
    h = jnp.maximum(h, 0.0)

    # fc2 -> lane-dense (Bt, E_pad) store
    out = jnp.dot(h, w2_ref[...], preferred_element_type=jnp.float32) + b2_ref[...]
    o_ref[...] = out.astype(o_ref.dtype)


def music_embedding_net(x, w1, b1, w2, b2, *, batch_tile=256):
    """Pallas implementation of MusicEmbeddingNet.forward.

    x : (B, F) float32
    w1: (H, F), b1: (H,)       -- PyTorch nn.Linear layout
    w2: (E, H), b2: (E,)
    returns (B, E) float32
    """
    B, F = x.shape
    H = w1.shape[0]
    E = w2.shape[0]

    # Pre-transpose weights in the wrapper so the kernel never transposes.
    # Pad the fc2 output dimension to a multiple of 128 lanes so the final
    # store is unmasked / lane-dense; slice the real E columns afterwards.
    E_pad = ((E + 127) // 128) * 128
    w1_t = jnp.asarray(w1, jnp.float32).T                          # (F, H)
    w2_t = jnp.zeros((H, E_pad), jnp.float32).at[:, :E].set(
        jnp.asarray(w2, jnp.float32).T)                            # (H, E_pad)
    b1_2d = jnp.asarray(b1, jnp.float32).reshape(1, H)
    b2_2d = jnp.zeros((1, E_pad), jnp.float32).at[:, :E].set(
        jnp.asarray(b2, jnp.float32).reshape(1, E))

    if B <= batch_tile:
        # Single-block path: everything fits in VMEM at once; no grid, no
        # per-step pipeline setup, no double-buffer allocation.
        out = pl.pallas_call(
            _mlp_kernel,
            out_shape=jax.ShapeDtypeStruct((B, E_pad), jnp.float32),
            in_specs=[pl.BlockSpec(memory_space=pltpu.MemorySpace.VMEM)] * 5,
            out_specs=pl.BlockSpec(memory_space=pltpu.MemorySpace.VMEM),
        )(x, w1_t, b1_2d, w2_t, b2_2d)
        return out[:, :E]

    # Batch-tiled path: grid over batch rows; weights/biases are mapped to the
    # same (0, 0) block every step so they stay VMEM-resident across the whole
    # grid, while x / out tiles are pipelined HBM<->VMEM behind the matmuls.
    Bt = batch_tile
    n_tiles = pl.cdiv(B, Bt)
    B_pad = n_tiles * Bt
    if B_pad != B:
        x = jnp.zeros((B_pad, F), x.dtype).at[:B].set(x)

    out = pl.pallas_call(
        _mlp_kernel,
        out_shape=jax.ShapeDtypeStruct((B_pad, E_pad), jnp.float32),
        grid_spec=pl.GridSpec(
            grid=(n_tiles,),
            in_specs=[
                pl.BlockSpec((Bt, F), lambda i: (i, 0)),       # x tile
                pl.BlockSpec((F, H), lambda i: (0, 0)),        # W1^T resident
                pl.BlockSpec((1, H), lambda i: (0, 0)),        # b1 resident
                pl.BlockSpec((H, E_pad), lambda i: (0, 0)),    # W2^T resident
                pl.BlockSpec((1, E_pad), lambda i: (0, 0)),    # b2 resident
            ],
            out_specs=pl.BlockSpec((Bt, E_pad), lambda i: (i, 0)),
        ),
        compiler_params=pltpu.CompilerParams(
            # Batch tiles are independent -> shard across TCs (v7x megacore).
            dimension_semantics=("parallel",)),
    )(x, w1_t, b1_2d, w2_t, b2_2d)
    return out[:B, :E]


if __name__ == "__main__":
    # input_size = 20 MFCCs + spectral_centroid + zero_crossing_rate = 22
    INPUT_SIZE = 22
    HIDDEN = 128
    EMBEDDING_SIZE = 22
    BATCH = 8

    key = jax.random.PRNGKey(0)
    kx, kw1, kb1, kw2, kb2, kx2 = jax.random.split(key, 6)

    # Deterministic parameter init (PyTorch-Linear-like uniform fan-in scaling)
    lim1 = 1.0 / jnp.sqrt(INPUT_SIZE)
    w1 = jax.random.uniform(kw1, (HIDDEN, INPUT_SIZE), jnp.float32, -lim1, lim1)
    b1 = jax.random.uniform(kb1, (HIDDEN,), jnp.float32, -lim1, lim1)

    lim2 = 1.0 / jnp.sqrt(HIDDEN)
    w2 = jax.random.uniform(kw2, (EMBEDDING_SIZE, HIDDEN), jnp.float32, -lim2, lim2)
    b2 = jax.random.uniform(kb2, (EMBEDDING_SIZE,), jnp.float32, -lim2, lim2)

    def ref_fwd(xv):
        return jnp.maximum(xv @ w1.T + b1, 0.0) @ w2.T + b2

    # 1) Small batch -> single-block (no-grid) path.
    x_small = jax.random.normal(kx, (BATCH, INPUT_SIZE), dtype=jnp.float32)
    out_small = jax.block_until_ready(
        music_embedding_net(x_small, w1, b1, w2, b2))
    assert out_small.shape == (BATCH, EMBEDDING_SIZE)
    assert jnp.allclose(out_small, ref_fwd(x_small), atol=1e-4, rtol=1e-4)

    # 2) Larger, non-tile-multiple batch -> batch-tiled grid path
    #    (exercises padding + resident weights across grid steps).
    BIG_BATCH = 300
    x_big = jax.random.normal(kx2, (BIG_BATCH, INPUT_SIZE), dtype=jnp.float32)
    out_big = jax.block_until_ready(
        music_embedding_net(x_big, w1, b1, w2, b2, batch_tile=256))
    assert out_big.shape == (BIG_BATCH, EMBEDDING_SIZE)
    assert jnp.allclose(out_big, ref_fwd(x_big), atol=1e-4, rtol=1e-4)

    print("KERNEL_OK")
</pallas_src>

<mosaic_0001>
module attributes {stable_mosaic.version = 11 : i64} {
  func.func @_mlp_kernel(%arg0: memref<8x22xf32, #tpu.memory_space<vmem>>, %arg1: memref<22x128xf32, #tpu.memory_space<vmem>>, %arg2: memref<1x128xf32, #tpu.memory_space<vmem>>, %arg3: memref<128x128xf32, #tpu.memory_space<vmem>>, %arg4: memref<1x128xf32, #tpu.memory_space<vmem>>, %arg5: memref<8x128xf32, #tpu.memory_space<vmem>>) attributes {dimension_semantics = [], scalar_prefetch = 0 : i64, scratch_operands = 0 : i64, tpu.core_type = #tpu.core_type<tc>} {
    %c0 = arith.constant 0 : index
    %c0_0 = arith.constant 0 : index
    %0 = vector.load %arg0[%c0, %c0_0] : memref<8x22xf32, #tpu.memory_space<vmem>>, vector<8x22xf32>
    %c0_1 = arith.constant 0 : index
    %c0_2 = arith.constant 0 : index
    %1 = vector.load %arg1[%c0_1, %c0_2] : memref<22x128xf32, #tpu.memory_space<vmem>>, vector<22x128xf32>
    %cst = arith.constant dense<0.000000e+00> : vector<8x128xf32>
    %2 = tpu.matmul %0, %1, %cst {dimension_numbers = #tpu.dot_dimension_numbers<[1], [0], [0], [1], [0, 0, 1, 1], [], []>} : vector<8x22xf32>, vector<22x128xf32>, vector<8x128xf32> -> vector<8x128xf32>
    %c0_3 = arith.constant 0 : index
    %c0_4 = arith.constant 0 : index
    %3 = vector.load %arg2[%c0_3, %c0_4] : memref<1x128xf32, #tpu.memory_space<vmem>>, vector<1x128xf32>
    %4 = vector.broadcast %3 : vector<1x128xf32> to vector<8x128xf32>
    %5 = arith.addf %2, %4 : vector<8x128xf32>
    %cst_5 = arith.constant 0.000000e+00 : f32
    %6 = vector.broadcast %cst_5 : f32 to vector<8x128xf32>
    %7 = arith.maximumf %5, %6 : vector<8x128xf32>
    %c0_6 = arith.constant 0 : index
    %c0_7 = arith.constant 0 : index
    %8 = vector.load %arg3[%c0_6, %c0_7] : memref<128x128xf32, #tpu.memory_space<vmem>>, vector<128x128xf32>
    %cst_8 = arith.constant dense<0.000000e+00> : vector<8x128xf32>
    %9 = tpu.matmul %7, %8, %cst_8 {dimension_numbers = #tpu.dot_dimension_numbers<[1], [0], [0], [1], [0, 0, 1, 1], [], []>} : vector<8x128xf32>, vector<128x128xf32>, vector<8x128xf32> -> vector<8x128xf32>
    %c0_9 = arith.constant 0 : index
    %c0_10 = arith.constant 0 : index
    %10 = vector.load %arg4[%c0_9, %c0_10] : memref<1x128xf32, #tpu.memory_space<vmem>>, vector<1x128xf32>
    %11 = vector.broadcast %10 : vector<1x128xf32> to vector<8x128xf32>
    %12 = arith.addf %9, %11 : vector<8x128xf32>
    %c0_11 = arith.constant 0 : index
    %c0_12 = arith.constant 0 : index
    %13 = vector.load %arg5[%c0_11, %c0_12] : memref<8x128xf32, #tpu.memory_space<vmem>>, vector<8x128xf32>
    tpu.vector_store %arg5[%c0_11, %c0_12], %12 {strides = array<i32>} : memref<8x128xf32, #tpu.memory_space<vmem>>, vector<8x128xf32>,
    return
  }
}

</mosaic_0001>

<bundles_post_ra>
// kernel: tpu_custom_call.1
= control target key start
LH: loop header
LB: loop body
LE: loop exit
PB: predicated region body
PF: predicated region fallthrough
CT: control target
= control target key end

     0   :  { %10 = vsyncpa [#allocation3], 0  ;;  %s479_s0 = inlined_call_operand.hbm [shape: f32[8,22], index: 0, kind: input, shape index: {}]   ;;  %s480_s1 = inlined_call_operand.hbm [shape: f32[22,128], index: 1, kind: input, shape index: {}]   ;;  %s481_s2 = inlined_call_operand.vmem [shape: f32[1,128], index: 2, kind: input, shape index: {}]   ;;  %s482_s3 = inlined_call_operand.hbm [shape: f32[128,128], index: 3, kind: input, shape index: {}]   ;;  %s483_s4 = inlined_call_operand.vmem [shape: f32[1,128], index: 4, kind: input, shape index: {}]   ;;  %s484_s5 = inlined_call_operand.hbm [shape: f32[8,128], index: 5, kind: output, shape index: {}]  }
   0x1   :  { %11 = vsyncpa [#allocation6], 0 }
   0x2   :  { %12 = vsyncpa [#allocation4], 0  ;;  %s423_s18 = smov [#allocation5]  }
   0x3   :  { %s28_s19 = sshll.u32 %s423_s18, 4  ;;  %s29_s19 = int_to_ptr.vmem [resolvable:$true] %s28_s19 }
   0x4   :  { %s345_s20 = scalar_lea.vmem %s29_s19, 384  ;;  %p350_p1 = scmp.lt.s32.totalorder %s29_s19, %s29_s19 }
   0x5   :  { %p346_p0 = scmp.ne.s32.totalorder %s29_s19, %s345_s20  ;;  %p351_p2 = scmp.lt.s32.totalorder %s345_s20, %s345_s20 }
   0x7   :  { %p352_p3 = por %p351_p2, %p350_p1 }
   0x9   :  { %p353_p4 = pnand %p352_p3, %p346_p0 }
   0xb   :  { %356 = shalt.err (!%p353_p4)
}
   0xc   :  { %s424_s21 = smov 128   ;;  %s425_s22 = smov 8  }
   0xd   :  { %34 = dma.hbm_to_vmem [thread:$0]  %s480_s1, 384, %s29_s19, [#allocation6], %s424_s21, %s424_s21, %s425_s22  }
   0xe   :  { %s426_s25 = smov [#allocation2]   ;;  %s427_s27 = smov [#allocation7]  }
   0xf   :  { %s19_s26 = sshll.u32 %s426_s25, 4  ;;  %s42_s28 = sshll.u32 %s427_s27, 4  ;;  %s20_s26 = int_to_ptr.vmem [resolvable:$true] %s19_s26  ;;  %s43_s28 = int_to_ptr.vmem [resolvable:$true] %s42_s28 }
  0x10   :  { %s365_s29 = scalar_lea.vmem %s20_s26, 128  ;;  %p370_p6 = scmp.lt.s32.totalorder %s20_s26, %s20_s26 }
  0x11   :  { %p366_p5 = scmp.ne.s32.totalorder %s20_s26, %s365_s29  ;;  %p371_p7 = scmp.lt.s32.totalorder %s365_s29, %s365_s29 }
  0x13   :  { %p372_p8 = por %p371_p7, %p370_p6 }
  0x15   :  { %p373_p9 = pnand %p372_p8, %p366_p5 }
  0x17   :  { %376 = shalt.err (!%p373_p9)
}
  0x18   :  { %22 = dma.hbm_to_vmem [thread:$0]  %s479_s0, 128, %s20_s26, [#allocation3]  }
  0x19   :  { %s385_s7 = scalar_lea.vmem %s43_s28, 2048  ;;  %p390_p11 = scmp.lt.s32.totalorder %s43_s28, %s43_s28 }
  0x1a   :  { %p386_p10 = scmp.ne.s32.totalorder %s43_s28, %s385_s7  ;;  %p391_p12 = scmp.lt.s32.totalorder %s385_s7, %s385_s7 }
  0x1c   :  { %p392_p13 = por %p391_p12, %p390_p11 }
  0x1e   :  { %p393_p0 = pnand %p392_p13, %p386_p10 }
  0x20   :  { %396 = shalt.err (!%p393_p0)
}
  0x21   :  { %48 = dma.hbm_to_vmem [thread:$0]  %s482_s3, 2048, %s43_s28, [#allocation6], %s424_s21, %s424_s21, %s425_s22  }
  0x22   :  { %417 = dma.done.wait [#allocation3], 128  }
  0x23   :  { %418 = vsyncadd [#allocation3], 4294967168 }
  0x24   :  { %419 = dma.done.wait [#allocation6], 2432  }
  0x25   :  { %420 = vsyncadd [#allocation6], 4294964864  ;;  %v428_v0 = vmov 0.0   ;;  %vm429_vm0 = vmmov 0   ;;  %vm75_vm1 = vcmask 1045504   ;;  %v62_v2 = vld [vmem:[#allocation5 + $0x8] sm:$0xff] }
  0x26   :  { %285 = vmatprep.subr.mxu0 %v428_v0  ;;  %291 = vmatprep.mubr.msk.f32.mxu0 %vm429_vm0, %v428_v0  ;;  %v63_v1 = vld [vmem:[#allocation5 + $0x10] sm:$0x3f]  ;;  %v164_v4 = vld [vmem:[#allocation7 + $0x70] sm:$0xff]  ;;  %v61_v5 = vld [vmem:[#allocation5] sm:$0xff]  ;;  %vm71_vm2 = vcmask 179200   ;;  %s430_s11 = smov [#allocation8]  }
  0x27   :  { %294 = vmatprep.subr.mxu1 %v428_v0  ;;  %326 = vmatprep.mubr.msk.f32.mxu1 %vm429_vm0, %v428_v0  ;;  %v165_v3 = vld [vmem:[#allocation7 + $0x78] sm:$0xff]  ;;  %v60_v6 = vld [vmem:[#allocation2] sm:$0xff]  ;;  %v163_v7 = vld [vmem:[#allocation7 + $0x68] sm:$0xff]  ;;  %s250_s12 = sshll.u32 %s430_s11, 4  ;;  %s251_s12 = int_to_ptr.vmem [resolvable:$true] %s250_s12 }
  0x28   :  { %286 = vmatpush3.msk.msra.mxu0 %vm75_vm1, %v63_v1  ;;  %295 = vmatpush3.msra.mxu1 %v165_v3  ;;  %v162_v8 = vld [vmem:[#allocation7 + $0x60] sm:$0xff]  ;;  %v161_v9 = vld [vmem:[#allocation7 + $0x58] sm:$0xff]  ;;  %v160_v10 = vld [vmem:[#allocation7 + $0x50] sm:$0xff]  ;;  %s397_s13 = scalar_lea.vmem %s251_s12, 128  ;;  %p402_p2 = scmp.lt.s32.totalorder %s251_s12, %s251_s12 }
  0x29   :  { %287 = vmatprep.subr.mxu0 %v428_v0  ;;  %296 = vmatprep.subr.mxu1 %v428_v0  ;;  %v159_v11 = vld [vmem:[#allocation7 + $0x48] sm:$0xff]  ;;  %v158_v12 = vld [vmem:[#allocation7 + $0x40] sm:$0xff]  ;;  %v157_v13 = vld [vmem:[#allocation7 + $0x38] sm:$0xff]  ;;  %p398_p1 = scmp.ne.s32.totalorder %s251_s12, %s397_s13  ;;  %p403_p3 = scmp.lt.s32.totalorder %s397_s13, %s397_s13 }
  0x2a   :  { %288 = vmatpush3.msra.mxu0 %v62_v2  ;;  %297 = vmatpush3.msra.mxu1 %v164_v4  ;;  %v156_v14 = vld [vmem:[#allocation7 + $0x30] sm:$0xff]  ;;  %v155_v15 = vld [vmem:[#allocation7 + $0x28] sm:$0xff]  ;;  %v154_v16 = vld [vmem:[#allocation7 + $0x20] sm:$0xff] }
  0x2b   :  { %289 = vmatprep.subr.mxu0 %v428_v0  ;;  %298 = vmatprep.subr.mxu1 %v428_v0  ;;  %v153_v17 = vld [vmem:[#allocation7 + $0x18] sm:$0xff]  ;;  %v152_v18 = vld [vmem:[#allocation7 + $0x10] sm:$0xff]  ;;  %v151_v19 = vld [vmem:[#allocation7 + $0x8] sm:$0xff]  ;;  %p404_p4 = por %p403_p3, %p402_p2 }
  0x2c   :  { %290 = vmatpush3.msra.mxu0 %v61_v5  ;;  %299 = vmatpush3.msra.mxu1 %v163_v7  ;;  %v150_v20 = vld [vmem:[#allocation7] sm:$0xff] }
  0x2d   :  { %292 = vmatmul.mubr.msk.f32.vlgmr.msra.gmra.mxu0 %vm71_vm2, %v60_v6  ;;  %300 = vmatprep.subr.mxu1 %v428_v0  ;;  %v260_v21 = vld [vmem:[%s481_s2] ss:$0 sm:$0xff]  ;;  %p405_p5 = pnand %p404_p4, %p398_p1 }
  0x2e   :  { %301 = vmatpush3.msra.mxu1 %v162_v8  ;;  %v263_v26 = vld [vmem:[%s483_s4] ss:$0 sm:$0xff] }
  0x2f   :  { %302 = vmatprep.subr.mxu1 %v428_v0 }
  0x30   :  { %303 = vmatpush3.msra.mxu1 %v161_v9 }
  0x31   :  { %304 = vmatprep.subr.mxu1 %v428_v0 }
  0x32   :  { %305 = vmatpush3.msra.mxu1 %v160_v10 }
  0x33   :  { %306 = vmatprep.subr.mxu1 %v428_v0 }
  0x34   :  { %307 = vmatpush3.msra.mxu1 %v159_v11 }
  0x35   :  { %308 = vmatprep.subr.mxu1 %v428_v0 }
  0x36   :  { %309 = vmatpush3.msra.mxu1 %v158_v12 }
  0x37   :  { %310 = vmatprep.subr.mxu1 %v428_v0 }
  0x38   :  { %311 = vmatpush3.msra.mxu1 %v157_v13 }
  0x39   :  { %312 = vmatprep.subr.mxu1 %v428_v0 }
  0x3a   :  { %313 = vmatpush3.msra.mxu1 %v156_v14 }
  0x3b   :  { %314 = vmatprep.subr.mxu1 %v428_v0 }
  0x3c   :  { %315 = vmatpush3.msra.mxu1 %v155_v15 }
  0x3d   :  { %316 = vmatprep.subr.mxu1 %v428_v0 }
  0x3e   :  { %317 = vmatpush3.msra.mxu1 %v154_v16 }
  0x3f   :  { %318 = vmatprep.subr.mxu1 %v428_v0 }
  0x40   :  { %319 = vmatpush3.msra.mxu1 %v153_v17 }
  0x41   :  { %320 = vmatprep.subr.mxu1 %v428_v0 }
  0x42   :  { %321 = vmatpush3.msra.mxu1 %v152_v18 }
  0x43   :  { %322 = vmatprep.subr.mxu1 %v428_v0 }
  0x44   :  { %323 = vmatpush3.msra.mxu1 %v151_v19 }
  0x45   :  { %324 = vmatprep.subr.mxu1 %v428_v0 }
  0x46   :  { %325 = vmatpush3.msra.mxu1 %v150_v20 }
  0xed   :  { %v145_v22 = vpop.f32.mrf.mxu0 }
  0xee   :  { %v146_v23 = vadd.f32 %v260_v21, %v145_v22 }
  0xef   :  { %v293_v24 = vpop.f32.mrf.mxu0 }
  0xf0   :  { %v149_v25 = vmax.f32 %v146_v23, 0.0 }
  0xf2   :  { %327 = vmatmul.mubr.f32.vlgmr.msra.gmra.mxu1 %v149_v25 }
 0x1b2   :  { %v239_v27 = vpop.f32.mrf.mxu1 }
 0x1b3   :  { %v240_v28 = vadd.f32 %v263_v26, %v239_v27 }
 0x1b4   :  { %v328_v29 = vpop.f32.mrf.mxu1 }
 0x1b5   :  { %243 = vst [vmem:[#allocation8] sm:$0xff] %v240_v28 }
 0x1b6   :  { %408 = shalt.err (!%p405_p5)
}
 0x1b7   :  { %253 = dma.vmem_to_hbm [thread:$0]  %s251_s12, 128, %s484_s5, [#allocation4]  }
 0x1b8   :  { %421 = dma.done.wait [#allocation4], 128  }
 0x1b9   :  { %422 = vsyncadd [#allocation4], 4294967168 }
 0x1ba   :  { %257 = vsyncpa [#allocation3], 1 }
 0x1bb   :  { %258 = vsyncpa [#allocation6], 1 }
 0x1bc   :  { %259 = vsyncpa [#allocation4], 1 }

</bundles_post_ra>
